<compile_context>
chip_gen: v6e
topology: v6e:2x2x1
jax: 0.10.0
libtpu: 0.0.40
codegen_flags: <defaults>
</compile_context>

<pallas_src>
import functools
import math

import jax
import jax.numpy as jnp
from jax import lax
from jax.experimental import pallas as pl
from jax.experimental.pallas import tpu as pltpu


def _tile(dim, target):
    """Tile size: `target` if it evenly divides `dim`, else the full dim.

    Full-extent blocks always satisfy the TPU (8, 128) block constraint, so
    small / ragged dims fall back to a single block.
    """
    if dim <= target:
        return dim
    return target if dim % target == 0 else dim


# ---------------------------------------------------------------------------
# Tiled linear projection:  y = x @ W.T + b   (W in nn.Linear layout (N, K))
# ---------------------------------------------------------------------------
def _linear_kernel(x_ref, w_ref, b_ref, o_ref, acc_ref):
    kstep = pl.program_id(2)

    @pl.when(kstep == 0)
    def _init():
        acc_ref[...] = jnp.zeros_like(acc_ref)

    # Contract last-with-last: the MXU consumes the weight tile without any
    # per-step transpose (no .T materialisation in the kernel).
    acc_ref[...] += lax.dot_general(
        x_ref[...], w_ref[...],
        dimension_numbers=(((1,), (1,)), ((), ())),
        preferred_element_type=jnp.float32)

    @pl.when(kstep == pl.num_programs(2) - 1)
    def _finalize():
        o_ref[...] = (acc_ref[...] + b_ref[...].astype(jnp.float32)).astype(o_ref.dtype)


def pallas_linear(x2d, w, b, *, tm=256, tn=256, tk=512):
    """x2d: (M, K), w: (N, K) [nn.Linear layout], b: (N,) -> (M, N)."""
    M, K = x2d.shape
    N = w.shape[0]
    tm, tn, tk = _tile(M, tm), _tile(N, tn), _tile(K, tk)
    grid = (M // tm, N // tn, K // tk)

    itemsize = jnp.dtype(x2d.dtype).itemsize
    cost = pl.CostEstimate(
        flops=2 * M * N * K,
        transcendentals=0,
        bytes_accessed=(M * K + N * K + M * N + N) * itemsize)

    return pl.pallas_call(
        _linear_kernel,
        out_shape=jax.ShapeDtypeStruct((M, N), x2d.dtype),
        grid_spec=pltpu.PrefetchScalarGridSpec(
            num_scalar_prefetch=0,
            grid=grid,
            in_specs=[
                pl.BlockSpec((tm, tk), lambda i, j, k: (i, k)),
                pl.BlockSpec((tn, tk), lambda i, j, k: (j, k)),
                pl.BlockSpec((1, tn), lambda i, j, k: (0, j)),
            ],
            out_specs=pl.BlockSpec((tm, tn), lambda i, j, k: (i, j)),
            scratch_shapes=[pltpu.VMEM((tm, tn), jnp.float32)]),
        compiler_params=pltpu.CompilerParams(
            dimension_semantics=("parallel", "parallel", "arbitrary")),
        cost_estimate=cost,
    )(x2d, w, b.reshape(1, N))


# ---------------------------------------------------------------------------
# Flash-style attention over (batch, q-tile, kv-tile) grid.
# All heads of the current q-tile are processed per step; heads live in the
# lane axis of the (.., S, D) blocks so inputs/outputs stay lane-dense.
# ---------------------------------------------------------------------------
def _mha_flash_kernel(*refs, nhead, head_dim, scale, has_mask):
    if has_mask:
        q_ref, k_ref, v_ref, mask_ref, o_ref, m_sc, l_sc, acc_sc = refs
    else:
        q_ref, k_ref, v_ref, o_ref, m_sc, l_sc, acc_sc = refs
        mask_ref = None

    ki = pl.program_id(2)

    @pl.when(ki == 0)
    def _init():
        m_sc[...] = jnp.full(m_sc.shape, -jnp.inf, dtype=m_sc.dtype)
        l_sc[...] = jnp.zeros_like(l_sc)
        acc_sc[...] = jnp.zeros_like(acc_sc)

    # Fold the 1/sqrt(hd) scale into q once (tq*D muls) rather than scaling
    # every (tq, tkv) score tile per head (H*tq*tkv muls).
    q = q_ref[0] * scale                             # (tq, D)   input dtype
    k = k_ref[0]                                     # (tkv, D)
    v = v_ref[0]                                     # (tkv, D)
    mask = mask_ref[...].astype(jnp.float32) if has_mask else None  # hoisted

    # NOTE: with tiny head_dim the per-head matmuls under-fill the MXU; the
    # head loop at least keeps HBM traffic lane-dense and transpose-free.
    for h in range(nhead):
        lo = h * head_dim
        hi = lo + head_dim
        q_h = q[:, lo:hi]                            # (tq, hd)
        k_h = k[:, lo:hi]                            # (tkv, hd)
        v_h = v[:, lo:hi]                            # (tkv, hd)

        # scores = q_h @ k_h^T  (contract d-with-d, no in-kernel transpose)
        s = lax.dot_general(
            q_h, k_h,
            dimension_numbers=(((1,), (1,)), ((), ())),
            preferred_element_type=jnp.float32)                 # (tq, tkv) f32
        if mask is not None:
            s = s + mask

        # online softmax update (running max / denominator / accumulator)
        m_prev = m_sc[h]                                         # (tq, 1)
        m_new = jnp.maximum(m_prev, jnp.max(s, axis=-1, keepdims=True))
        alpha = jnp.exp(m_prev - m_new)
        p = jnp.exp(s - m_new)                                   # (tq, tkv)
        l_sc[h] = alpha * l_sc[h] + jnp.sum(p, axis=-1, keepdims=True)
        acc_sc[h] = alpha * acc_sc[h] + jnp.dot(
            p.astype(v_h.dtype), v_h, preferred_element_type=jnp.float32)
        m_sc[h] = m_new

    @pl.when(ki == pl.num_programs(2) - 1)
    def _finalize():
        l_all = l_sc[...]                               # (H, tq, 1)
        inv = pl.reciprocal(l_all, approx=True)         # EUP slot
        inv = inv * (2.0 - l_all * inv)                 # Newton step -> f32 accurate
        outs = [acc_sc[h] * inv[h] for h in range(nhead)]
        # lane-dense write: last dim = D (all heads packed)
        o_ref[0] = jnp.concatenate(outs, axis=-1).astype(o_ref.dtype)


def pallas_mha_attention(q, k, v, attn_mask, nhead, *, tq=256, tkv=512):
    """q: (B, Sq, D), k/v: (B, Sk, D), attn_mask: None or (Sq, Sk).

    Returns (B, Sq, D) with head h in columns [h*hd, (h+1)*hd).
    """
    B, Sq, D = q.shape
    Sk = k.shape[1]
    hd = D // nhead
    tq = _tile(Sq, tq)
    tkv = _tile(Sk, tkv)
    grid = (B, Sq // tq, Sk // tkv)
    has_mask = attn_mask is not None

    in_specs = [
        pl.BlockSpec((1, tq, D), lambda b, qi, ki: (b, qi, 0)),
        pl.BlockSpec((1, tkv, D), lambda b, qi, ki: (b, ki, 0)),
        pl.BlockSpec((1, tkv, D), lambda b, qi, ki: (b, ki, 0)),
    ]
    args = [q, k, v]
    if has_mask:
        in_specs.append(pl.BlockSpec((tq, tkv), lambda b, qi, ki: (qi, ki)))
        args.append(attn_mask)

    kernel = functools.partial(
        _mha_flash_kernel, nhead=nhead, head_dim=hd,
        scale=1.0 / math.sqrt(hd), has_mask=has_mask)

    itemsize = jnp.dtype(q.dtype).itemsize
    mask_bytes = (Sq * Sk * jnp.dtype(attn_mask.dtype).itemsize) if has_mask else 0
    cost = pl.CostEstimate(
        flops=4 * B * Sq * Sk * D,
        transcendentals=B * nhead * Sq * Sk,
        bytes_accessed=(2 * B * Sq * D + 2 * B * Sk * D) * itemsize + mask_bytes)

    return pl.pallas_call(
        kernel,
        out_shape=jax.ShapeDtypeStruct((B, Sq, D), q.dtype),
        grid_spec=pltpu.PrefetchScalarGridSpec(
            num_scalar_prefetch=0,
            grid=grid,
            in_specs=in_specs,
            out_specs=pl.BlockSpec((1, tq, D), lambda b, qi, ki: (b, qi, 0)),
            scratch_shapes=[
                pltpu.VMEM((nhead, tq, 1), jnp.float32),    # running max
                pltpu.VMEM((nhead, tq, 1), jnp.float32),    # running denom
                pltpu.VMEM((nhead, tq, hd), jnp.float32),   # running output acc
            ]),
        compiler_params=pltpu.CompilerParams(
            dimension_semantics=("parallel", "parallel", "arbitrary")),
        cost_estimate=cost,
    )(*args)


# ---------------------------------------------------------------------------
# Full module forward
# ---------------------------------------------------------------------------
def multi_head_attention(params, query, key, value, attn_mask=None):
    """query: (B, Sq, D); key/value: (B, Sk, D); attn_mask: None or (Sq, Sk)."""
    B, Sq, D = query.shape
    H = params["nhead"]

    if (query is key) and (key is value):
        # Self-attention: fuse Q/K/V projections into one stacked matmul
        # (3x wider N, reads the activations from HBM once).
        w_qkv = jnp.concatenate([params["wq"], params["wk"], params["wv"]], axis=0)
        b_qkv = jnp.concatenate([params["bq"], params["bk"], params["bv"]], axis=0)
        qkv = pallas_linear(query.reshape(-1, D), w_qkv, b_qkv)     # (B*Sq, 3D)
        q = qkv[:, :D].reshape(B, Sq, D)
        k = qkv[:, D:2 * D].reshape(B, Sq, D)
        v = qkv[:, 2 * D:].reshape(B, Sq, D)
    elif key is value:
        # Encoder-decoder style: K/V share the same memory tensor -> fuse.
        Sk = key.shape[1]
        q = pallas_linear(query.reshape(-1, D), params["wq"], params["bq"]).reshape(B, Sq, D)
        w_kv = jnp.concatenate([params["wk"], params["wv"]], axis=0)
        b_kv = jnp.concatenate([params["bk"], params["bv"]], axis=0)
        kv = pallas_linear(key.reshape(-1, D), w_kv, b_kv)          # (B*Sk, 2D)
        k = kv[:, :D].reshape(B, Sk, D)
        v = kv[:, D:].reshape(B, Sk, D)
    else:
        Sk = key.shape[1]
        q = pallas_linear(query.reshape(-1, D), params["wq"], params["bq"]).reshape(B, Sq, D)
        k = pallas_linear(key.reshape(-1, D), params["wk"], params["bk"]).reshape(B, Sk, D)
        v = pallas_linear(value.reshape(-1, D), params["wv"], params["bv"]).reshape(B, Sk, D)

    # No (B,S,H,hd)->(B,H,S,hd) HBM transposes: heads stay packed in the last
    # axis and are sliced inside the attention kernel.
    attn = pallas_mha_attention(q, k, v, attn_mask, H)              # (B, Sq, D)

    out2d = pallas_linear(attn.reshape(-1, D), params["wo"], params["bo"])
    return out2d.reshape(B, Sq, D)


# ---------------------------------------------------------------------------
# Pure-JAX reference (for correctness check)
# ---------------------------------------------------------------------------
def reference(params, query, key, value, attn_mask=None):
    D = params["wq"].shape[0]
    H = params["nhead"]
    hd = D // H
    B, Sq, _ = query.shape
    Sk = key.shape[1]

    def lin(x, w, b):
        return x @ w.T + b

    q = lin(query, params["wq"], params["bq"]).reshape(B, Sq, H, hd).transpose(0, 2, 1, 3)
    k = lin(key, params["wk"], params["bk"]).reshape(B, Sk, H, hd).transpose(0, 2, 1, 3)
    v = lin(value, params["wv"], params["bv"]).reshape(B, Sk, H, hd).transpose(0, 2, 1, 3)
    scores = jnp.einsum("bhqd,bhkd->bhqk", q, k) / math.sqrt(hd)
    if attn_mask is not None:
        scores = scores + attn_mask
    attn = jax.nn.softmax(scores, axis=-1)
    out = jnp.einsum("bhqk,bhkd->bhqd", attn, v).transpose(0, 2, 1, 3).reshape(B, Sq, D)
    return lin(out, params["wo"], params["bo"])


if __name__ == "__main__":
    d_model, nhead = 32, 4
    B, S = 2, 8

    key0 = jax.random.PRNGKey(0)
    ks = jax.random.split(key0, 16)
    wscale = 1.0 / math.sqrt(d_model)

    params = {
        "nhead": nhead,
        "wq": jax.random.uniform(ks[0], (d_model, d_model), jnp.float32, -wscale, wscale),
        "bq": jax.random.uniform(ks[1], (d_model,), jnp.float32, -wscale, wscale),
        "wk": jax.random.uniform(ks[2], (d_model, d_model), jnp.float32, -wscale, wscale),
        "bk": jax.random.uniform(ks[3], (d_model,), jnp.float32, -wscale, wscale),
        "wv": jax.random.uniform(ks[4], (d_model, d_model), jnp.float32, -wscale, wscale),
        "bv": jax.random.uniform(ks[5], (d_model,), jnp.float32, -wscale, wscale),
        "wo": jax.random.uniform(ks[6], (d_model, d_model), jnp.float32, -wscale, wscale),
        "bo": jax.random.uniform(ks[7], (d_model,), jnp.float32, -wscale, wscale),
    }

    # --- Test 1: self-attention with a causal additive mask (fused QKV path,
    #             masked flash kernel).
    x = jax.random.normal(ks[8], (B, S, d_model), jnp.float32)
    attn_mask = jnp.where(
        jnp.tril(jnp.ones((S, S), jnp.bool_)), 0.0, -1e9).astype(jnp.float32)
    out1 = jax.block_until_ready(multi_head_attention(params, x, x, x, attn_mask))
    ref1 = reference(params, x, x, x, attn_mask)
    assert out1.shape == (B, S, d_model)
    assert jnp.allclose(out1, ref1, atol=1e-4, rtol=1e-4), "self-attention mismatch"

    # --- Test 2: cross-attention, no mask, different KV length (separate
    #             projections, maskless kernel — no dummy zero-mask DMA).
    S_kv = 16
    q_in = jax.random.normal(ks[9], (B, S, d_model), jnp.float32)
    k_in = jax.random.normal(ks[10], (B, S_kv, d_model), jnp.float32)
    v_in = jax.random.normal(ks[11], (B, S_kv, d_model), jnp.float32)
    out2 = jax.block_until_ready(multi_head_attention(params, q_in, k_in, v_in, None))
    ref2 = reference(params, q_in, k_in, v_in, None)
    assert out2.shape == (B, S, d_model)
    assert jnp.allclose(out2, ref2, atol=1e-4, rtol=1e-4), "cross-attention mismatch"

    # --- Test 3: encoder-decoder attention with shared K/V source tensor
    #             (fused K/V projection path).
    mem = jax.random.normal(ks[12], (B, S_kv, d_model), jnp.float32)
    out3 = jax.block_until_ready(multi_head_attention(params, q_in, mem, mem, None))
    ref3 = reference(params, q_in, mem, mem, None)
    assert out3.shape == (B, S, d_model)
    assert jnp.allclose(out3, ref3, atol=1e-4, rtol=1e-4), "shared-KV attention mismatch"

    print("KERNEL_OK")
</pallas_src>

<mosaic_0001>
module attributes {stable_mosaic.version = 11 : i64} {
  func.func @_linear_kernel(%arg0: i32, %arg1: i32, %arg2: i32, %arg3: memref<16x32xf32, #tpu.memory_space<vmem>>, %arg4: memref<96x32xf32, #tpu.memory_space<vmem>>, %arg5: memref<1x96xf32, #tpu.memory_space<vmem>>, %arg6: memref<16x96xf32, #tpu.memory_space<vmem>>, %arg7: memref<16x96xf32, #tpu.memory_space<vmem>>) attributes {dimension_semantics = [#tpu.dimension_semantics<parallel>, #tpu.dimension_semantics<parallel>, #tpu.dimension_semantics<arbitrary>], iteration_bounds = array<i64: 1, 1, 1>, scalar_prefetch = 0 : i64, scratch_operands = 1 : i64, tpu.core_type = #tpu.core_type<tc>, window_params = [{transform_indices = @transform_0, window_bounds = array<i64: 16, 32>}, {transform_indices = @transform_1, window_bounds = array<i64: 96, 32>}, {transform_indices = @transform_2, window_bounds = array<i64: 1, 96>}, {transform_indices = @transform_3, window_bounds = array<i64: 16, 96>}]} {
    %c0_i32 = arith.constant 0 : i32
    %0 = arith.cmpi eq, %arg2, %c0_i32 : i32
    %1 = arith.extui %0 : i1 to i32
    %c0_i32_0 = arith.constant 0 : i32
    %2 = arith.cmpi ne, %1, %c0_i32_0 : i32
    scf.if %2 {
      %cst_10 = arith.constant 0.000000e+00 : f32
      %12 = vector.broadcast %cst_10 : f32 to vector<16x96xf32>
      %c0_11 = arith.constant 0 : index
      %c0_12 = arith.constant 0 : index
      %13 = vector.load %arg7[%c0_11, %c0_12] : memref<16x96xf32, #tpu.memory_space<vmem>>, vector<16x96xf32>
      tpu.vector_store %arg7[%c0_11, %c0_12], %12 {strides = array<i32>} : memref<16x96xf32, #tpu.memory_space<vmem>>, vector<16x96xf32>,
    } else {
    }
    %c0 = arith.constant 0 : index
    %c0_1 = arith.constant 0 : index
    %3 = vector.load %arg7[%c0, %c0_1] : memref<16x96xf32, #tpu.memory_space<vmem>>, vector<16x96xf32>
    %c0_2 = arith.constant 0 : index
    %c0_3 = arith.constant 0 : index
    %4 = vector.load %arg3[%c0_2, %c0_3] : memref<16x32xf32, #tpu.memory_space<vmem>>, vector<16x32xf32>
    %c0_4 = arith.constant 0 : index
    %c0_5 = arith.constant 0 : index
    %5 = vector.load %arg4[%c0_4, %c0_5] : memref<96x32xf32, #tpu.memory_space<vmem>>, vector<96x32xf32>
    %cst = arith.constant dense<0.000000e+00> : vector<16x96xf32>
    %6 = tpu.matmul %4, %5, %cst {dimension_numbers = #tpu.dot_dimension_numbers<[1], [1], [0], [0], [0, 0, 1, 0], [], []>} : vector<16x32xf32>, vector<96x32xf32>, vector<16x96xf32> -> vector<16x96xf32>
    %7 = arith.addf %3, %6 : vector<16x96xf32>
    %c0_6 = arith.constant 0 : index
    %c0_7 = arith.constant 0 : index
    %8 = vector.load %arg7[%c0_6, %c0_7] : memref<16x96xf32, #tpu.memory_space<vmem>>, vector<16x96xf32>
    tpu.vector_store %arg7[%c0_6, %c0_7], %7 {strides = array<i32>} : memref<16x96xf32, #tpu.memory_space<vmem>>, vector<16x96xf32>,
    %c0_i32_8 = arith.constant 0 : i32
    %9 = arith.cmpi eq, %arg2, %c0_i32_8 : i32
    %10 = arith.extui %9 : i1 to i32
    %c0_i32_9 = arith.constant 0 : i32
    %11 = arith.cmpi ne, %10, %c0_i32_9 : i32
    scf.if %11 {
      %c0_10 = arith.constant 0 : index
      %c0_11 = arith.constant 0 : index
      %12 = vector.load %arg7[%c0_10, %c0_11] : memref<16x96xf32, #tpu.memory_space<vmem>>, vector<16x96xf32>
      %c0_12 = arith.constant 0 : index
      %c0_13 = arith.constant 0 : index
      %13 = vector.load %arg5[%c0_12, %c0_13] : memref<1x96xf32, #tpu.memory_space<vmem>>, vector<1x96xf32>
      %14 = vector.broadcast %13 : vector<1x96xf32> to vector<16x96xf32>
      %15 = arith.addf %12, %14 : vector<16x96xf32>
      %c0_14 = arith.constant 0 : index
      %c0_15 = arith.constant 0 : index
      %16 = vector.load %arg6[%c0_14, %c0_15] : memref<16x96xf32, #tpu.memory_space<vmem>>, vector<16x96xf32>
      tpu.vector_store %arg6[%c0_14, %c0_15], %15 {strides = array<i32>} : memref<16x96xf32, #tpu.memory_space<vmem>>, vector<16x96xf32>,
    } else {
    }
    return
  }
  func.func @transform_0(%arg0: i32, %arg1: i32, %arg2: i32) -> (i32, i32) {
    %c0_i32 = arith.constant 0 : i32
    return %arg0, %arg2 : i32, i32
  }
  func.func @transform_1(%arg0: i32, %arg1: i32, %arg2: i32) -> (i32, i32) {
    %c0_i32 = arith.constant 0 : i32
    return %arg1, %arg2 : i32, i32
  }
  func.func @transform_2(%arg0: i32, %arg1: i32, %arg2: i32) -> (i32, i32) {
    %c0_i32 = arith.constant 0 : i32
    %c0_i32_0 = arith.constant 0 : i32
    return %c0_i32, %arg1 : i32, i32
  }
  func.func @transform_3(%arg0: i32, %arg1: i32, %arg2: i32) -> (i32, i32) {
    %c0_i32 = arith.constant 0 : i32
    return %arg0, %arg1 : i32, i32
  }
}

</mosaic_0001>

<bundles_post_ra>
// kernel: tpu_custom_call.1
= control target key start
LH: loop header
LB: loop body
LE: loop exit
PB: predicated region body
PF: predicated region fallthrough
CT: control target
= control target key end

     0   :  { %vm38_vm0 = vcmask 261120   ;;  %vm19_vm1 = vcmask 785408   ;;  %v275_v2 = vmov 0.0   ;;  %s379_s0 = inlined_call_operand.vmem [shape: f32[16,32], index: 0, kind: input, shape index: {}]   ;;  %s380_s1 = inlined_call_operand.vmem [shape: f32[96,32], index: 1, kind: input, shape index: {}]   ;;  %s381_s2 = inlined_call_operand.vmem [shape: f32[1,96], index: 2, kind: input, shape index: {}]   ;;  %s382_s3 = inlined_call_operand.hbm [shape: f32[16,96], index: 3, kind: output, shape index: {}]  }
   0x1   :  { %v37_v0 = vld [vmem:[%s380_s1 + $0x58] sm:$0xff]  ;;  %v36_v1 = vld [vmem:[%s380_s1 + $0x50] sm:$0xff]  ;;  %21 = vst.msk [vmem:[#allocation2 + $0x8] sm:$0xff] %vm19_vm1, %v275_v2  ;;  %20 = vst.msk [vmem:[#allocation2] sm:$0xff] %vm19_vm1, %v275_v2 }
   0x2   :  { %222 = vmatprep.subr.msk.mxu0 %vm38_vm0, %v37_v0  ;;  %v35_v3 = vld [vmem:[%s380_s1 + $0x48] sm:$0xff]  ;;  %v24_v4 = vld [vmem:[%s379_s0] sm:$0xff] }
   0x3   :  { %223 = vmatpush3.xpose.msk.msra.mxu0 %vm38_vm0, %v37_v0 }
   0x4   :  { %224 = vmatprep.subr.msk.mxu0 %vm38_vm0, %v36_v1 }
   0x5   :  { %8 = vsyncpa [#allocation4], 0  ;;  %246 = vmatprep.mubr.msk.f32.mxu0 %vm38_vm0, %v24_v4  ;;  %v34_v5 = vld [vmem:[%s380_s1 + $0x40] sm:$0xff]  ;;  %v33_v6 = vld [vmem:[%s380_s1 + $0x38] sm:$0xff]  ;;  %s276_s14 = smov [#allocation3]  }
   0x6   :  { %v32_v7 = vld [vmem:[%s380_s1 + $0x30] sm:$0xff]  ;;  %v31_v8 = vld [vmem:[%s380_s1 + $0x28] sm:$0xff]  ;;  %v30_v9 = vld [vmem:[%s380_s1 + $0x20] sm:$0xff]  ;;  %s182_s15 = sshll.u32 %s276_s14, 4  ;;  %s183_s15 = int_to_ptr.vmem [resolvable:$true] %s182_s15 }
   0x7   :  { %225 = vmatpush3.xpose.msk.msra.mxu0 %vm38_vm0, %v36_v1  ;;  %v29_v10 = vld [vmem:[%s380_s1 + $0x18] sm:$0xff]  ;;  %v28_v11 = vld [vmem:[%s380_s1 + $0x10] sm:$0xff]  ;;  %v27_v12 = vld [vmem:[%s380_s1 + $0x8] sm:$0xff]  ;;  %p258_p1 = scmp.lt.s32.totalorder %s183_s15, %s183_s15 }
   0x8   :  { %226 = vmatprep.subr.msk.mxu0 %vm38_vm0, %v35_v3  ;;  %v26_v13 = vld [vmem:[%s380_s1] sm:$0xff]  ;;  %v25_v14 = vld [vmem:[%s379_s0 + $0x8] sm:$0xff]  ;;  %s253_s0 = scalar_lea.vmem %s183_s15, 256 }
   0x9   :  { %v23_v15 = vld [vmem:[#allocation2 + $0x8] sm:$0xff]  ;;  %v22_v17 = vld [vmem:[#allocation2] sm:$0xff]  ;;  %p254_p0 = scmp.ne.s32.totalorder %s183_s15, %s253_s0  ;;  %p259_p2 = scmp.lt.s32.totalorder %s253_s0, %s253_s0 }
   0xa   :  { %v207_v21 = vld [vmem:[%s381_s2] ss:$0 sm:$0xff] }
   0xb   :  { %227 = vmatpush3.xpose.msk.msra.mxu0 %vm38_vm0, %v35_v3  ;;  %p260_p3 = por %p259_p2, %p258_p1 }
   0xc   :  { %228 = vmatprep.subr.msk.mxu0 %vm38_vm0, %v34_v5 }
   0xd   :  { %p261_p4 = pnand %p260_p3, %p254_p0 }
   0xf   :  { %229 = vmatpush3.xpose.msk.msra.mxu0 %vm38_vm0, %v34_v5 }
  0x10   :  { %230 = vmatprep.subr.msk.mxu0 %vm38_vm0, %v33_v6 }
  0x13   :  { %231 = vmatpush3.xpose.msk.msra.mxu0 %vm38_vm0, %v33_v6 }
  0x14   :  { %232 = vmatprep.subr.msk.mxu0 %vm38_vm0, %v32_v7 }
  0x17   :  { %233 = vmatpush3.xpose.msk.msra.mxu0 %vm38_vm0, %v32_v7 }
  0x18   :  { %234 = vmatprep.subr.msk.mxu0 %vm38_vm0, %v31_v8 }
  0x1b   :  { %235 = vmatpush3.xpose.msk.msra.mxu0 %vm38_vm0, %v31_v8 }
  0x1c   :  { %236 = vmatprep.subr.msk.mxu0 %vm38_vm0, %v30_v9 }
  0x1f   :  { %237 = vmatpush3.xpose.msk.msra.mxu0 %vm38_vm0, %v30_v9 }
  0x20   :  { %238 = vmatprep.subr.msk.mxu0 %vm38_vm0, %v29_v10 }
  0x23   :  { %239 = vmatpush3.xpose.msk.msra.mxu0 %vm38_vm0, %v29_v10 }
  0x24   :  { %240 = vmatprep.subr.msk.mxu0 %vm38_vm0, %v28_v11 }
  0x27   :  { %241 = vmatpush3.xpose.msk.msra.mxu0 %vm38_vm0, %v28_v11 }
  0x28   :  { %242 = vmatprep.subr.msk.mxu0 %vm38_vm0, %v27_v12 }
  0x2b   :  { %243 = vmatpush3.xpose.msk.msra.mxu0 %vm38_vm0, %v27_v12 }
  0x2c   :  { %244 = vmatprep.subr.msk.mxu0 %vm38_vm0, %v26_v13 }
  0x2f   :  { %245 = vmatpush3.xpose.msk.msra.mxu0 %vm38_vm0, %v26_v13 }
  0x32   :  { %247 = vmatmul.mubr.msk.f32.vlgmr.msra.gmra.mxu0 %vm38_vm0, %v25_v14 }
  0xf2   :  { %v248_v16 = vpop.f32.mrf.mxu0 }
  0xf3   :  { %v157_v18 = vadd.f32 %v248_v16, %v23_v15 }
  0xf4   :  { %v147_v19 = vpop.f32.mrf.mxu0 }
  0xf5   :  { %160 = vst.msk [vmem:[#allocation2 + $0x8] sm:$0xff] %vm19_vm1, %v157_v18  ;;  %v156_v20 = vadd.f32 %v147_v19, %v22_v17 }
  0xf7   :  { %159 = vst.msk [vmem:[#allocation2] sm:$0xff] %vm19_vm1, %v156_v20 }
  0xfc   :  { %v165_v22 = vld [vmem:[#allocation2 + $0x8] sm:$0xff] }
  0xfd   :  { %v174_v23 = vadd.f32 %v207_v21, %v165_v22 }
  0xfe   :  { %v164_v24 = vld [vmem:[#allocation2] sm:$0xff] }
  0xff   :  { %v173_v25 = vadd.f32 %v207_v21, %v164_v24  ;;  %176 = vst.msk [vmem:[#allocation3 + $0x8] sm:$0xff] %vm19_vm1, %v174_v23 }
 0x101   :  { %175 = vst.msk [vmem:[#allocation3] sm:$0xff] %vm19_vm1, %v173_v25 }
 0x102   :  { %264 = shalt.err (!%p261_p4)
}
 0x103   :  { %s277_s16 = smov 128   ;;  %s278_s2 = smov 8  }
 0x104   :  { %188 = dma.vmem_to_hbm [thread:$0]  %s183_s15, 256, %s382_s3, [#allocation4], %s277_s16, %s277_s16, %s278_s2  }
 0x105   :  { %273 = dma.done.wait [#allocation4], 256  }
 0x106   :  { %274 = vsyncadd [#allocation4], 4294967040 }
 0x107   :  { %192 = vsyncpa [#allocation4], 1 }

</bundles_post_ra>
